<compile_context>
chip_gen: v5e
topology: v5e:2x2
jax: 0.10.0
libtpu: 0.0.40
codegen_flags: <defaults>
</compile_context>

<pallas_src>
import functools

import jax
import jax.numpy as jnp
from jax.experimental import pallas as pl
from jax.experimental.pallas import tpu as pltpu

HIDDEN = 64


def _critic_kernel(x_ref, w1_ref, b1_ref, w2_ref, b2_ref, w3_ref, b3_ref, o_ref,
                   *, matmul_dtype):
    # x_ref: (state_dim, TB).  w1/w2 stored (out, in); b1/b2 as (out, 1);
    # w3 passed as (HIDDEN, 1) f32; b3 as a 1-D scalar in SMEM.
    x = x_ref[...].astype(matmul_dtype)
    h1 = jnp.dot(w1_ref[...], x, preferred_element_type=jnp.float32) + b1_ref[...]
    h1 = jnp.maximum(h1, 0.0)                                          # (64, TB) f32
    h2 = jnp.dot(w2_ref[...], h1.astype(matmul_dtype),
                 preferred_element_type=jnp.float32) + b2_ref[...]
    h2 = jnp.maximum(h2, 0.0)                                          # (64, TB) f32
    # fc3: VPU multiply + sublane reduce (XLU) instead of an M=1 MXU push.
    q = jnp.sum(w3_ref[...] * h2, axis=0, keepdims=True) + b3_ref[0]
    o_ref[...] = q.astype(o_ref.dtype)                                 # (1, TB), lane-dense


def _round_up(x, m):
    return ((int(x) + m - 1) // m) * m


def critic_forward_t(state_t, params, *, tile_b=None, matmul_dtype=jnp.bfloat16):
    """Critic forward for a batch stored column-major.

    state_t: (state_dim, B) -- batch on the lane axis, no host transpose needed.
    Returns (B, 1) f32 values (same layout as the torch module's output).
    """
    state_dim, B = state_t.shape
    w1, b1, w2, b2, w3, b3 = (params[k] for k in ("w1", "b1", "w2", "b2", "w3", "b3"))

    # Batch tile: big enough to amortize per-grid-step overhead, capped at 16K
    # columns (v7x VMEM headroom) and at ceil(B/2) rounded to 128 so the grid
    # has >= 2 steps for megacore sharding whenever B is large enough.
    if tile_b is None:
        tile_b = 16384
    tb = max(128, _round_up(min(int(tile_b), 16384), 128))
    tb = min(tb, max(128, _round_up(-(-B // 2), 128)))
    grid = (pl.cdiv(B, tb),)          # partial last block is masked by Pallas

    wdt = jnp.dtype(matmul_dtype)
    w1c = w1.astype(wdt)
    w2c = w2.astype(wdt)
    w3c = w3.reshape(HIDDEN, 1).astype(jnp.float32)   # broadcast over lanes in-kernel
    b3c = b3.reshape(1).astype(jnp.float32)           # 1-D scalar -> SMEM (no 2-D padding)

    resident = lambda a: pl.BlockSpec(a.shape, lambda i: (0,) * a.ndim)

    sbytes = jnp.dtype(state_t.dtype).itemsize
    cost = pl.CostEstimate(
        flops=2 * B * (state_dim * HIDDEN + HIDDEN * HIDDEN + HIDDEN),
        transcendentals=0,
        bytes_accessed=(sbytes * B * state_dim                       # one state read
                        + 4 * B                                      # output write
                        + wdt.itemsize * (HIDDEN * state_dim + HIDDEN * HIDDEN)
                        + 4 * (HIDDEN + HIDDEN + HIDDEN + 1)),       # biases + w3
    )

    kernel = functools.partial(_critic_kernel, matmul_dtype=wdt)

    out_t = pl.pallas_call(
        kernel,
        out_shape=jax.ShapeDtypeStruct((1, B), jnp.float32),
        grid=grid,
        in_specs=[
            pl.BlockSpec((state_dim, tb), lambda i: (0, i)),        # pipelined state tile
            resident(w1c), resident(b1),
            resident(w2c), resident(b2),
            resident(w3c),
            pl.BlockSpec(memory_space=pltpu.MemorySpace.SMEM),      # b3 scalar
        ],
        out_specs=pl.BlockSpec((1, tb), lambda i: (0, i)),
        compiler_params=pltpu.CompilerParams(dimension_semantics=("parallel",)),
        cost_estimate=cost,
    )(state_t, w1c, b1, w2c, b2, w3c, b3c)

    return out_t.reshape(B, 1)        # (1,B) -> (B,1): free bitcast, torch layout


def critic_forward(state, params, **kw):
    """Torch-layout convenience wrapper: state is (B, state_dim).

    The transpose here costs an extra HBM pass; keep rollout buffers in
    (state_dim, B) layout and call critic_forward_t directly when possible.
    """
    return critic_forward_t(state.T, params, **kw)


def init_params(key, state_dim, hidden=HIDDEN):
    """Mirror nn.Linear default init U(-1/sqrt(fan_in), .); weights stored (out, in)."""
    ks = jax.random.split(key, 6)

    def lin(kw_, kb_, fan_in, fan_out):
        bound = 1.0 / float(fan_in) ** 0.5
        w = jax.random.uniform(kw_, (fan_out, fan_in), jnp.float32, -bound, bound)
        b = jax.random.uniform(kb_, (fan_out, 1), jnp.float32, -bound, bound)
        return w, b

    w1, b1 = lin(ks[0], ks[1], state_dim, hidden)
    w2, b2 = lin(ks[2], ks[3], hidden, hidden)
    w3, b3 = lin(ks[4], ks[5], hidden, 1)
    return dict(w1=w1, b1=b1, w2=w2, b2=b2, w3=w3, b3=b3)


def critic_ref(state, p):
    h1 = jnp.maximum(state @ p["w1"].T + p["b1"].T, 0.0)
    h2 = jnp.maximum(h1 @ p["w2"].T + p["b2"].T, 0.0)
    return h2 @ p["w3"].T + p["b3"].T


if __name__ == "__main__":
    key = jax.random.PRNGKey(0)
    k_param, k_s1, k_s2 = jax.random.split(key, 3)

    state_dim = 8   # LunarLander-v2 observation dim
    params = init_params(k_param, state_dim)

    # Rollout buffers kept batch-on-lane, (state_dim, B): no host transpose / pad.
    state_small_t = jax.random.normal(k_s1, (state_dim, 8), jnp.float32)
    state_multi_t = jax.random.normal(k_s2, (state_dim, 300), jnp.float32)

    out_small = jax.block_until_ready(critic_forward_t(state_small_t, params))
    out_multi = jax.block_until_ready(critic_forward_t(state_multi_t, params, tile_b=128))

    exp_small = critic_ref(state_small_t.T, params)
    exp_multi = critic_ref(state_multi_t.T, params)

    assert out_small.shape == (8, 1), out_small.shape
    assert out_multi.shape == (300, 1), out_multi.shape
    # bf16 matmul operands (f32 accumulation / epilogue): loosened parity check.
    assert jnp.allclose(out_small, exp_small, atol=5e-2, rtol=5e-2), (out_small, exp_small)
    assert jnp.allclose(out_multi, exp_multi, atol=5e-2, rtol=5e-2), (out_multi, exp_multi)

    # Exact-parity f32 path through the torch-layout convenience wrapper.
    out_exact = jax.block_until_ready(
        critic_forward(state_multi_t.T, params, matmul_dtype=jnp.float32))
    assert out_exact.shape == (300, 1), out_exact.shape
    assert jnp.allclose(out_exact, exp_multi, atol=1e-5, rtol=1e-5), (out_exact, exp_multi)

    print("KERNEL_OK")
</pallas_src>

<mosaic_0001>
module attributes {stable_mosaic.version = 11 : i64} {
  func.func @_critic_kernel(%arg0: i32, %arg1: memref<8x128xf32, #tpu.memory_space<vmem>>, %arg2: memref<64x8xbf16, #tpu.memory_space<vmem>>, %arg3: memref<64x1xf32, #tpu.memory_space<vmem>>, %arg4: memref<64x64xbf16, #tpu.memory_space<vmem>>, %arg5: memref<64x1xf32, #tpu.memory_space<vmem>>, %arg6: memref<64x1xf32, #tpu.memory_space<vmem>>, %arg7: memref<1xf32, #tpu.memory_space<smem>>, %arg8: memref<1x128xf32, #tpu.memory_space<vmem>>) attributes {dimension_semantics = [#tpu.dimension_semantics<parallel>], iteration_bounds = array<i64: 1>, scalar_prefetch = 0 : i64, scratch_operands = 0 : i64, tpu.core_type = #tpu.core_type<tc>, window_params = [{transform_indices = @transform_0, window_bounds = array<i64: 8, 128>}, {pipeline_mode = #tpu.pipeline_mode<synchronous>, transform_indices = @transform_1, window_bounds = array<i64: 64, 8>}, {pipeline_mode = #tpu.pipeline_mode<synchronous>, transform_indices = @transform_2, window_bounds = array<i64: 64, 1>}, {pipeline_mode = #tpu.pipeline_mode<synchronous>, transform_indices = @transform_3, window_bounds = array<i64: 64, 64>}, {pipeline_mode = #tpu.pipeline_mode<synchronous>, transform_indices = @transform_4, window_bounds = array<i64: 64, 1>}, {pipeline_mode = #tpu.pipeline_mode<synchronous>, transform_indices = @transform_5, window_bounds = array<i64: 64, 1>}, {transform_indices = @transform_6, window_bounds = array<i64: 1>}, {transform_indices = @transform_7, window_bounds = array<i64: 1, 128>}]} {
    %c0 = arith.constant 0 : index
    %c0_0 = arith.constant 0 : index
    %0 = vector.load %arg1[%c0, %c0_0] : memref<8x128xf32, #tpu.memory_space<vmem>>, vector<8x128xf32>
    %1 = arith.truncf %0 : vector<8x128xf32> to vector<8x128xbf16>
    %c0_1 = arith.constant 0 : index
    %c0_2 = arith.constant 0 : index
    %2 = vector.load %arg2[%c0_1, %c0_2] : memref<64x8xbf16, #tpu.memory_space<vmem>>, vector<64x8xbf16>
    %cst = arith.constant dense<0.000000e+00> : vector<64x128xf32>
    %3 = tpu.matmul %2, %1, %cst {dimension_numbers = #tpu.dot_dimension_numbers<[1], [0], [0], [1], [0, 0, 1, 1], [], []>} : vector<64x8xbf16>, vector<8x128xbf16>, vector<64x128xf32> -> vector<64x128xf32>
    %c0_3 = arith.constant 0 : index
    %c0_4 = arith.constant 0 : index
    %4 = vector.load %arg3[%c0_3, %c0_4] : memref<64x1xf32, #tpu.memory_space<vmem>>, vector<64x1xf32>
    %5 = vector.broadcast %4 : vector<64x1xf32> to vector<64x128xf32>
    %6 = arith.addf %3, %5 : vector<64x128xf32>
    %cst_5 = arith.constant 0.000000e+00 : f32
    %7 = vector.broadcast %cst_5 : f32 to vector<64x128xf32>
    %8 = arith.maximumf %6, %7 : vector<64x128xf32>
    %c0_6 = arith.constant 0 : index
    %c0_7 = arith.constant 0 : index
    %9 = vector.load %arg4[%c0_6, %c0_7] : memref<64x64xbf16, #tpu.memory_space<vmem>>, vector<64x64xbf16>
    %10 = arith.truncf %8 : vector<64x128xf32> to vector<64x128xbf16>
    %cst_8 = arith.constant dense<0.000000e+00> : vector<64x128xf32>
    %11 = tpu.matmul %9, %10, %cst_8 {dimension_numbers = #tpu.dot_dimension_numbers<[1], [0], [0], [1], [0, 0, 1, 1], [], []>} : vector<64x64xbf16>, vector<64x128xbf16>, vector<64x128xf32> -> vector<64x128xf32>
    %c0_9 = arith.constant 0 : index
    %c0_10 = arith.constant 0 : index
    %12 = vector.load %arg5[%c0_9, %c0_10] : memref<64x1xf32, #tpu.memory_space<vmem>>, vector<64x1xf32>
    %13 = vector.broadcast %12 : vector<64x1xf32> to vector<64x128xf32>
    %14 = arith.addf %11, %13 : vector<64x128xf32>
    %cst_11 = arith.constant 0.000000e+00 : f32
    %15 = vector.broadcast %cst_11 : f32 to vector<64x128xf32>
    %16 = arith.maximumf %14, %15 : vector<64x128xf32>
    %c0_12 = arith.constant 0 : index
    %c0_13 = arith.constant 0 : index
    %17 = vector.load %arg6[%c0_12, %c0_13] : memref<64x1xf32, #tpu.memory_space<vmem>>, vector<64x1xf32>
    %18 = vector.broadcast %17 : vector<64x1xf32> to vector<64x128xf32>
    %19 = arith.mulf %18, %16 : vector<64x128xf32>
    %cst_14 = arith.constant dense<0.000000e+00> : vector<128xf32>
    %20 = vector.multi_reduction <add>, %19, %cst_14 [0] : vector<64x128xf32> to vector<128xf32>
    %21 = vector.shape_cast %20 : vector<128xf32> to vector<1x128xf32>
    %c0_15 = arith.constant 0 : index
    %22 = memref.load %arg7[%c0_15] : memref<1xf32, #tpu.memory_space<smem>>
    %23 = vector.broadcast %22 : f32 to vector<1x128xf32>
    %24 = arith.addf %21, %23 : vector<1x128xf32>
    %c0_16 = arith.constant 0 : index
    %c0_17 = arith.constant 0 : index
    %25 = vector.load %arg8[%c0_16, %c0_17] : memref<1x128xf32, #tpu.memory_space<vmem>>, vector<1x128xf32>
    tpu.vector_store %arg8[%c0_16, %c0_17], %24 {strides = array<i32>} : memref<1x128xf32, #tpu.memory_space<vmem>>, vector<1x128xf32>,
    return
  }
  func.func @transform_0(%arg0: i32) -> (i32, i32) {
    %c0_i32 = arith.constant 0 : i32
    %c0_i32_0 = arith.constant 0 : i32
    return %c0_i32, %arg0 : i32, i32
  }
  func.func @transform_1(%arg0: i32) -> (i32, i32) {
    %c0_i32 = arith.constant 0 : i32
    %c0_i32_0 = arith.constant 0 : i32
    %c0_i32_1 = arith.constant 0 : i32
    return %c0_i32, %c0_i32_0 : i32, i32
  }
  func.func @transform_2(%arg0: i32) -> (i32, i32) {
    %c0_i32 = arith.constant 0 : i32
    %c0_i32_0 = arith.constant 0 : i32
    %c0_i32_1 = arith.constant 0 : i32
    return %c0_i32, %c0_i32_0 : i32, i32
  }
  func.func @transform_3(%arg0: i32) -> (i32, i32) {
    %c0_i32 = arith.constant 0 : i32
    %c0_i32_0 = arith.constant 0 : i32
    %c0_i32_1 = arith.constant 0 : i32
    return %c0_i32, %c0_i32_0 : i32, i32
  }
  func.func @transform_4(%arg0: i32) -> (i32, i32) {
    %c0_i32 = arith.constant 0 : i32
    %c0_i32_0 = arith.constant 0 : i32
    %c0_i32_1 = arith.constant 0 : i32
    return %c0_i32, %c0_i32_0 : i32, i32
  }
  func.func @transform_5(%arg0: i32) -> (i32, i32) {
    %c0_i32 = arith.constant 0 : i32
    %c0_i32_0 = arith.constant 0 : i32
    %c0_i32_1 = arith.constant 0 : i32
    return %c0_i32, %c0_i32_0 : i32, i32
  }
  func.func @transform_6(%arg0: i32) -> i32 {
    %c0_i32 = arith.constant 0 : i32
    %c0_i32_0 = arith.constant 0 : i32
    return %c0_i32 : i32
  }
  func.func @transform_7(%arg0: i32) -> (i32, i32) {
    %c0_i32 = arith.constant 0 : i32
    %c0_i32_0 = arith.constant 0 : i32
    return %c0_i32, %arg0 : i32, i32
  }
}

</mosaic_0001>

<bundles_post_ra>
// kernel: tpu_custom_call.1
= control target key start
LH: loop header
LB: loop body
LE: loop exit
PB: predicated region body
PF: predicated region fallthrough
CT: control target
= control target key end

     0   :  { %vm120_vm0 = vcmask 1043456   ;;  %v464_v3 = vmov 0   ;;  %vm107_vm1 = vcmask 64512   ;;  %s615_s0 = inlined_call_operand.vmem [shape: f32[8,8], index: 0, kind: input, shape index: {}]   ;;  %s616_s1 = inlined_call_operand.vmem [shape: bf16[64,8], index: 1, kind: input, shape index: {}]   ;;  %s617_s2 = inlined_call_operand.vmem [shape: f32[64,1], index: 2, kind: input, shape index: {}]   ;;  %s618_s3 = inlined_call_operand.vmem [shape: bf16[64,64], index: 3, kind: input, shape index: {}]   ;;  %s619_s4 = inlined_call_operand.vmem [shape: f32[64,1], index: 4, kind: input, shape index: {}]   ;;  %s620_s5 = inlined_call_operand.vmem [shape: f32[64,1], index: 5, kind: input, shape index: {}]   ;;  %s621_s6 = inlined_call_operand.<no memory space> [shape: f32[1], index: 6, kind: input, shape index: {}]   ;;  %s622_s7 = inlined_call_operand.hbm [shape: f32[1,8], index: 7, kind: output, shape index: {}]  }
   0x1   :  { %v45_v0 = vld [vmem:[%s617_s2 + $0x30] sm:$0xff]  ;;  %v43_v1 = vld [vmem:[%s617_s2 + $0x20] sm:$0xff]  ;;  %435 = vset.pattern.permute.xlu0 %v464_v3  ;;  %436 = vset.pattern.permute.xlu1 %v464_v3  ;;  %v421_v6 = vld [vmem:[%s616_s1 + $0x8] sm:$0xff] }
   0x2   :  { %v29_v2 = vld [vmem:[%s615_s0] sm:$0xff]  ;;  %79 = vperm.xlu0 %435, %v45_v0   ;;  %69 = vperm.xlu1 %436, %v43_v1   ;;  %v41_v7 = vld [vmem:[%s617_s2 + $0x10] sm:$0xff] }
   0x3   :  { %v30_v4 = vpack.c.bf16 %v29_v2, %v29_v2  ;;  %437 = vset.pattern.permute.xlu2 %v464_v3  ;;  %v420_v8 = vld [vmem:[%s616_s1] sm:$0xff] }
   0x4   :  { %59 = vperm.xlu2 %437, %v41_v7  }
   0x5   :  { %v122_v5 = vsel %vm120_vm0, %v30_v4, 0 }
   0x6   :  { %428 = vmatpush.bf16.msra.mxu3 %v122_v5  ;;  %131 = vmatpush.bf16.msra.mxu0 %v122_v5 }
   0x7   :  { %13 = vsyncpa [#allocation4], 0  ;;  %v46_v9 = vld [vmem:[%s617_s2 + $0x38] sm:$0xff]  ;;  %v44_v10 = vld [vmem:[%s617_s2 + $0x28] sm:$0xff]  ;;  %vm241_vm2 = vcmask 523264   ;;  %s465_s14 = smov [#allocation3]  }
   0x8   :  { %v42_v11 = vld [vmem:[%s617_s2 + $0x18] sm:$0xff]  ;;  %v39_v12 = vld [vmem:[%s617_s2] sm:$0xff]  ;;  %v40_v13 = vld [vmem:[%s617_s2 + $0x8] sm:$0xff]  ;;  %s369_s15 = sshll.u32 %s465_s14, 4  ;;  %s371_s18 = sshll.u32 %s622_s7, 4  ;;  %s370_s15 = int_to_ptr.vmem [resolvable:$true] %s369_s15  ;;  %s372_s18 = int_to_ptr.hbm [resolvable:$true] %s371_s18 }
   0x9   :  { %397 = vmatmul.msk.bf16.vlgmr.msra.gmra.mxu3 %vm107_vm1, %v421_v6  ;;  %396 = vmatmul.msk.bf16.vlgmr.msra.gmra.mxu0 %vm107_vm1, %v420_v8  ;;  %v173_v14 = vld [vmem:[%s619_s4] sm:$0xff]  ;;  %v422_v15 = vld [vmem:[%s616_s1 + $0x10] sm:$0xff]  ;;  %v174_v16 = vld [vmem:[%s619_s4 + $0x8] sm:$0xff] }
   0xa   :  { %84 = vperm.xlu0 %435, %v46_v9   ;;  %74 = vperm.xlu1 %436, %v44_v10   ;;  %v175_v17 = vld [vmem:[%s619_s4 + $0x10] sm:$0xff]  ;;  %v176_v18 = vld [vmem:[%s619_s4 + $0x18] sm:$0xff]  ;;  %v177_v19 = vld [vmem:[%s619_s4 + $0x20] sm:$0xff] }
   0xb   :  { %v291_v20 = vld [vmem:[%s620_s5] sm:$0xff]  ;;  %v292_v21 = vld [vmem:[%s620_s5 + $0x8] sm:$0xff]  ;;  %v423_v22 = vld [vmem:[%s616_s1 + $0x18] sm:$0xff] }
   0xc   :  { %64 = vperm.xlu2 %437, %v42_v11   ;;  %v293_v23 = vld [vmem:[%s620_s5 + $0x10] sm:$0xff]  ;;  %v178_v24 = vld [vmem:[%s619_s4 + $0x28] sm:$0xff]  ;;  %v294_v25 = vld [vmem:[%s620_s5 + $0x18] sm:$0xff] }
   0xd   :  { %v179_v26 = vld [vmem:[%s619_s4 + $0x30] sm:$0xff]  ;;  %v295_v27 = vld [vmem:[%s620_s5 + $0x20] sm:$0xff]  ;;  %v180_v28 = vld [vmem:[%s619_s4 + $0x38] sm:$0xff] }
   0xe   :  { %v296_v29 = vld [vmem:[%s620_s5 + $0x28] sm:$0xff]  ;;  %v297_v30 = vld [vmem:[%s620_s5 + $0x30] sm:$0xff]  ;;  %v298_v31 = vld [vmem:[%s620_s5 + $0x38] sm:$0xff] }
   0xf   :  { %v424_v4 = vld [vmem:[%s618_s3] sm:$0xff]  ;;  %v426_v5 = vld [vmem:[%s618_s3 + $0x10] sm:$0xff]  ;;  %v425_v6 = vld [vmem:[%s618_s3 + $0x8] sm:$0xff] }
  0x10   :  { %v427_v7 = vld [vmem:[%s618_s3 + $0x18] sm:$0xff] }
  0x12   :  { %49 = vperm.xlu0 %435, %v39_v12   ;;  %54 = vperm.xlu1 %436, %v40_v13  }
  0x14   :  { %183 = vperm.xlu2 %437, %v173_v14  }
  0x19   :  { %398 = vmatmul.msk.bf16.gmra.mxu3 %vm107_vm1, %v422_v15 }
  0x1a   :  { %188 = vperm.xlu0 %435, %v174_v16   ;;  %193 = vperm.xlu1 %436, %v175_v17  }
  0x1c   :  { %198 = vperm.xlu2 %437, %v176_v18  }
  0x22   :  { %203 = vperm.xlu0 %435, %v177_v19   ;;  %301 = vperm.xlu1 %436, %v291_v20  }
  0x24   :  { %306 = vperm.xlu2 %437, %v292_v21  }
  0x29   :  { %399 = vmatmul.msk.bf16.gmra.mxu3 %vm107_vm1, %v423_v22 }
  0x2a   :  { %311 = vperm.xlu0 %435, %v293_v23   ;;  %208 = vperm.xlu1 %436, %v178_v24  }
  0x2c   :  { %316 = vperm.xlu2 %437, %v294_v25  }
  0x32   :  { %213 = vperm.xlu0 %435, %v179_v26   ;;  %321 = vperm.xlu1 %436, %v295_v27  }
  0x34   :  { %218 = vperm.xlu2 %437, %v180_v28  }
  0x3a   :  { %326 = vperm.xlu0 %435, %v296_v29   ;;  %331 = vperm.xlu1 %436, %v297_v30  }
  0x3c   :  { %336 = vperm.xlu2 %437, %v298_v31  }
  0x5e   :  { %v60_v39 = vpop.permute.xlu2 %59 }
  0x66   :  { %v65_v50 = vpop.permute.xlu2 %64 }
  0x6e   :  { %v184_v8 = vpop.permute.xlu2 %183 }
  0x74   :  { %v80_v36 = vpop.permute.xlu0 %79  ;;  %v70_v37 = vpop.permute.xlu1 %69 }
  0x76   :  { %v199_v11 = vpop.permute.xlu2 %198 }
  0x7c   :  { %v85_v41 = vpop.permute.xlu0 %84  ;;  %v75_v42 = vpop.permute.xlu1 %74 }
  0x7e   :  { %v307_v15 = vpop.permute.xlu2 %306 }
  0x84   :  { %v50_v57 = vpop.permute.xlu0 %49  ;;  %v55_v58 = vpop.permute.xlu1 %54 }
  0x86   :  { %v133_v40 = vpop.f32.mrf.mxu0  ;;  %v317_v22 = vpop.permute.xlu2 %316 }
  0x87   :  { %v134_v60 = vadd.f32 %v133_v40, %v50_v57 }
  0x89   :  { %v153_v0 = vmax.f32 %v134_v60, 0.0 }
  0x8c   :  { %v138_v32 = vpop.f32.mrf.mxu3  ;;  %v189_v9 = vpop.permute.xlu0 %188 }
  0x8d   :  { %v139_v55 = vadd.f32 %v138_v32, %v60_v39  ;;  %v194_v10 = vpop.permute.xlu1 %193 }
  0x8e   :  { %v135_v54 = vpop.f32.mrf.mxu0  ;;  %v219_v39 = vpop.permute.xlu2 %218 }
  0x8f   :  { %v136_v61 = vadd.f32 %v135_v54, %v55_v58  ;;  %v155_v63 = vmax.f32 %v139_v55, 0.0 }
  0x91   :  { %v154_v1 = vmax.f32 %v136_v61, 0.0 }
  0x93   :  { %v169_v3 = vpack.c.bf16 %v154_v1, %v153_v0 }
  0x94   :  { %v140_v33 = vpop.f32.mrf.mxu3  ;;  %v204_v13 = vpop.permute.xlu0 %203 }
  0x95   :  { %v141_v51 = vadd.f32 %v140_v33, %v65_v50  ;;  %v302_v14 = vpop.permute.xlu1 %301 }
  0x97   :  { %v156_v59 = vmax.f32 %v141_v51, 0.0 }
  0x99   :  { %v170_v2 = vpack.c.bf16 %v156_v59, %v155_v63  ;;  %v337_v59 = vpop.permute.xlu2 %336 }
  0x9c   :  { %v143_v34 = vpop.f32.mrf.mxu3  ;;  %v312_v18 = vpop.permute.xlu0 %311 }
  0x9d   :  { %v144_v47 = vadd.f32 %v143_v34, %v70_v37  ;;  %v209_v19 = vpop.permute.xlu1 %208 }
  0x9f   :  { %v157_v56 = vmax.f32 %v144_v47, 0.0 }
  0xa4   :  { %v145_v35 = vpop.f32.mrf.mxu3  ;;  %v214_v29 = vpop.permute.xlu0 %213 }
  0xa5   :  { %v146_v45 = vadd.f32 %v145_v35, %v75_v42  ;;  %v322_v33 = vpop.permute.xlu1 %321 }
  0xa7   :  { %v158_v52 = vmax.f32 %v146_v45, 0.0 }
  0xa9   :  { %v171_v62 = vpack.c.bf16 %v158_v52, %v157_v56 }
  0xac   :  { %v148_v38 = vpop.f32.mrf.mxu3  ;;  %v327_v52 = vpop.permute.xlu0 %326 }
  0xad   :  { %v149_v43 = vadd.f32 %v148_v38, %v80_v36  ;;  %v332_v56 = vpop.permute.xlu1 %331 }
  0xaf   :  { %v159_v48 = vmax.f32 %v149_v43, 0.0 }
  0xb4   :  { %v150_v44 = vpop.f32.mrf.mxu3 }
  0xb5   :  { %v151_v46 = vadd.f32 %v150_v44, %v85_v41 }
  0xb7   :  { %v160_v49 = vmax.f32 %v151_v46, 0.0 }
  0xb9   :  { %v172_v53 = vpack.c.bf16 %v160_v49, %v159_v48 }
  0xbb   :  { %258 = vmatpush.bf16.msra.mxu1 %v172_v53  ;;  %429 = vmatpush.bf16.msra.mxu2 %v172_v53 }
  0xbf   :  { %259 = vmatpush.bf16.msra.mxu1 %v171_v62  ;;  %430 = vmatpush.bf16.msra.mxu2 %v171_v62 }
  0xc3   :  { %260 = vmatpush.bf16.msra.mxu1 %v170_v2  ;;  %431 = vmatpush.bf16.msra.mxu2 %v170_v2 }
  0xc7   :  { %261 = vmatpush.bf16.msra.mxu1 %v169_v3  ;;  %432 = vmatpush.bf16.msra.mxu2 %v169_v3 }
  0xca   :  { %416 = vmatmul.msk.bf16.vlgmr.msra.gmra.mxu1 %vm241_vm2, %v424_v4  ;;  %418 = vmatmul.msk.bf16.vlgmr.msra.gmra.mxu2 %vm241_vm2, %v426_v5  ;;  %v361_v4 = vstv %s621_s6 }
  0xda   :  { %417 = vmatmul.msk.bf16.gmra.mxu1 %vm241_vm2, %v425_v6  ;;  %419 = vmatmul.msk.bf16.gmra.mxu2 %vm241_vm2, %v427_v7 }
 0x147   :  { %v263_v12 = vpop.f32.mrf.mxu1 }
 0x148   :  { %v264_v24 = vadd.f32 %v263_v12, %v184_v8 }
 0x14a   :  { %v283_v27 = vmax.f32 %v264_v24, 0.0 }
 0x14c   :  { %v339_v35 = vmul.f32 %v302_v14, %v283_v27 }
 0x14d   :  { %v273_v16 = vpop.f32.mrf.mxu2 }
 0x14e   :  { %v274_v31 = vadd.f32 %v273_v16, %v204_v13 }
 0x14f   :  { %v265_v17 = vpop.f32.mrf.mxu1 }
 0x150   :  { %v266_v21 = vadd.f32 %v265_v17, %v189_v9  ;;  %v287_v40 = vmax.f32 %v274_v31, 0.0 }
 0x152   :  { %v284_v26 = vmax.f32 %v266_v21, 0.0  ;;  %v343_v48 = vmul.f32 %v322_v33, %v287_v40 }
 0x154   :  { %v340_v32 = vmul.f32 %v307_v15, %v284_v26 }
 0x155   :  { %v275_v20 = vpop.f32.mrf.mxu2 }
 0x156   :  { %v276_v36 = vadd.f32 %v275_v20, %v209_v19  ;;  %v347_v41 = vadd.f32 %v340_v32, %v339_v35 }
 0x157   :  { %v268_v23 = vpop.f32.mrf.mxu1 }
 0x158   :  { %v269_v25 = vadd.f32 %v268_v23, %v194_v10  ;;  %v288_v44 = vmax.f32 %v276_v36, 0.0 }
 0x15a   :  { %v285_v28 = vmax.f32 %v269_v25, 0.0  ;;  %v344_v53 = vmul.f32 %v327_v52, %v288_v44 }
 0x15c   :  { %v341_v37 = vmul.f32 %v312_v18, %v285_v28 }
 0x15d   :  { %v278_v30 = vpop.f32.mrf.mxu2 }
 0x15e   :  { %v279_v42 = vadd.f32 %v278_v30, %v214_v29  ;;  %v348_v45 = vadd.f32 %v347_v41, %v341_v37 }
 0x15f   :  { %v270_v34 = vpop.f32.mrf.mxu1 }
 0x160   :  { %v271_v38 = vadd.f32 %v270_v34, %v199_v11  ;;  %v289_v49 = vmax.f32 %v279_v42, 0.0 }
 0x162   :  { %v286_v43 = vmax.f32 %v271_v38, 0.0  ;;  %v345_v57 = vmul.f32 %v332_v56, %v289_v49 }
 0x164   :  { %v342_v46 = vmul.f32 %v317_v22, %v286_v43 }
 0x165   :  { %v280_v47 = vpop.f32.mrf.mxu2 }
 0x166   :  { %v349_v50 = vadd.f32 %v348_v45, %v342_v46  ;;  %v281_v51 = vadd.f32 %v280_v47, %v219_v39 }
 0x168   :  { %v350_v54 = vadd.f32 %v349_v50, %v343_v48  ;;  %v290_v55 = vmax.f32 %v281_v51, 0.0 }
 0x16a   :  { %v351_v58 = vadd.f32 %v350_v54, %v344_v53  ;;  %v346_v60 = vmul.f32 %v337_v59, %v290_v55 }
 0x16c   :  { %v352_v61 = vadd.f32 %v351_v58, %v345_v57 }
 0x16e   :  { %v353_v62 = vadd.f32 %v352_v61, %v346_v60 }
 0x170   :  { %v354_v63 = vrot.slane %v353_v62, 4 }
 0x172   :  { %v355_v0 = vadd.f32 %v354_v63, %v353_v62 }
 0x174   :  { %v356_v1 = vrot.slane %v355_v0, 2 }
 0x176   :  { %v357_v2 = vadd.f32 %v356_v1, %v355_v0 }
 0x178   :  { %v358_v3 = vrot.slane %v357_v2, 1 }
 0x17a   :  { %v359_v5 = vadd.f32 %v358_v3, %v357_v2 }
 0x17c   :  { %v362_v6 = vadd.f32 %v361_v4, %v359_v5 }
 0x17e   :  { %363 = vst [vmem:[#allocation3] sm:$0x1] %v362_v6 }
 0x17f   :  { %374 = dma.vmem_to_hbm [thread:$0]  %s370_s15, 16, %s372_s18, [#allocation4]  }
 0x180   :  { %462 = dma.done.wait [#allocation4], 16  }
 0x181   :  { %463 = vsyncadd [#allocation4], 4294967280 }
 0x182   :  { %379 = vsyncpa [#allocation4], 1 }

</bundles_post_ra>
